<compile_context>
chip_gen: v5e
topology: v5e:2x2
jax: 0.10.0
libtpu: 0.0.40
codegen_flags: <defaults>
</compile_context>

<pallas_src>
import functools

import jax
import jax.numpy as jnp
from jax.experimental import pallas as pl
from jax.experimental.pallas import tpu as pltpu

_EPS = 1e-5
_LANES = 128
_SUBLANES = 8
_MIN_GRID_STEPS = 8                   # >= 4 steps per TensorCore on 2-TC chips (v7x)
_TILE_BYTE_BUDGET = 6 * 1024 * 1024   # dbuf in/out tiles + fp32 temporaries
_VMEM_LIMIT_BYTES = 32 * 1024 * 1024  # > v5e's 16 MiB scoped default, OK on all chips


def _cdiv(a, b):
    return -(-a // b)


def _round_up(a, b):
    return _cdiv(a, b) * b


def _ln_rowwise_kernel(x_ref, w_ref, o_ref, *, dim):
    """One logical row per tile row; reduce over the full last axis (D)."""
    x = x_ref[...].astype(jnp.float32)
    inv_d = jnp.float32(1.0 / dim)
    mean = jnp.sum(x, axis=-1, keepdims=True) * inv_d
    xc = x - mean
    var = jnp.sum(xc * xc, axis=-1, keepdims=True) * inv_d
    o_ref[...] = (xc * jax.lax.rsqrt(var + _EPS)) * w_ref[...]


def _ln_packed_kernel(x_ref, w_ref, avg_ref, o_ref):
    """Lane-packed path (dim < 128, 128 % dim == 0): `pack` logical rows share the
    128-lane axis.  Segment mean / variance (broadcast back to every lane of the
    segment) use the resident averaging matrix `avg` on the MXU.  HIGHEST
    precision keeps the fp32 squared terms from being rounded to bf16."""
    x = x_ref[...].astype(jnp.float32)                                # (rows, lanes)
    avg = avg_ref[...]                                                # (lanes, lanes)
    mean = jnp.dot(x, avg, preferred_element_type=jnp.float32,
                   precision=jax.lax.Precision.HIGHEST)
    xc = x - mean
    var = jnp.dot(xc * xc, avg, preferred_element_type=jnp.float32,
                  precision=jax.lax.Precision.HIGHEST)
    o_ref[...] = (xc * jax.lax.rsqrt(var + _EPS)) * w_ref[...]


def layer_norm(x, weight):
    """LayerNorm over the last dim (eps=1e-5, fp32 accumulation), scaled by `weight`.

    `x` may be any float dtype (bf16/f32/...); it is read in its native dtype and
    only cast to fp32 on VMEM tiles.  Output is float32 (non-XLA module branch).
    No wrapper-side padding/slicing: every reshape here is a contiguous bitcast."""
    orig_shape = x.shape
    D = orig_shape[-1]
    N = 1
    for s in orig_shape[:-1]:
        N *= s
    w = weight.astype(jnp.float32)

    # Lane packing so stores are full 128-lane wide when D divides 128 and the row
    # count splits evenly into packed rows.  Real DiT dims (multiples of 128) take
    # the plain row-wise path, which is already lane-dense.
    if D < _LANES and _LANES % D == 0 and N % (_LANES // D) == 0:
        pack = _LANES // D
    else:
        pack = 1
        # TODO(synk): D that is neither a multiple nor a divisor of 128 (or a row
        # count not divisible by the pack factor) still uses lane-masked stores.
    lanes = pack * D
    n_rows = N // pack

    x2 = x.reshape(n_rows, lanes)                  # contiguous reshape -> bitcast
    w_row = (jnp.tile(w, pack) if pack > 1 else w).reshape(1, lanes)

    in_bytes = jnp.dtype(x.dtype).itemsize
    # Double-buffered input + fp32 output tiles plus ~3 block-sized fp32 temporaries
    # (cast x, xc, xc*xc) per packed row.
    per_row_bytes = 2 * lanes * (in_bytes + 4) + 3 * lanes * 4
    budget_rows = max(
        _SUBLANES, (_TILE_BYTE_BUDGET // per_row_bytes) // _SUBLANES * _SUBLANES
    )

    if n_rows <= _SUBLANES:
        block_rows = n_rows                        # block == full array extent
    else:
        # Aim for >= _MIN_GRID_STEPS grid steps (pipeline overlap + both v7x TCs
        # busy); negligible cost on 1-TC v5e/v6e.  No even-grid rounding: with no
        # padding it would only shrink tiles, and with >= 8 steps the <= 1-step
        # imbalance on a 2-TC chip is small.
        min_step_rows = _round_up(_cdiv(n_rows, _MIN_GRID_STEPS), _SUBLANES)
        block_rows = min(budget_rows, min_step_rows, _round_up(n_rows, _SUBLANES))
    num_blocks = _cdiv(n_rows, block_rows)
    # Ragged final block: the OOB part of the input tile is undefined but rows /
    # segments are independent, and the OOB part of the output tile is masked on
    # writeback, so no wrapper-side pad or slice is needed.

    if pack > 1:
        seg = jnp.arange(lanes, dtype=jnp.int32) // D
        avg = jnp.where(seg[:, None] == seg[None, :],
                        jnp.float32(1.0 / D), jnp.float32(0.0))      # (lanes, lanes)
        kernel = _ln_packed_kernel
        in_specs = [
            pl.BlockSpec((block_rows, lanes), lambda i: (i, 0)),
            pl.BlockSpec((1, lanes), lambda i: (0, 0)),      # resident weight
            pl.BlockSpec((lanes, lanes), lambda i: (0, 0)),  # resident avg matrix
        ]
        operands = (x2, w_row, avg)
    else:
        kernel = functools.partial(_ln_rowwise_kernel, dim=D)
        in_specs = [
            pl.BlockSpec((block_rows, lanes), lambda i: (i, 0)),
            pl.BlockSpec((1, lanes), lambda i: (0, 0)),      # resident weight
        ]
        operands = (x2, w_row)

    out = pl.pallas_call(
        kernel,
        out_shape=jax.ShapeDtypeStruct((n_rows, lanes), jnp.float32),
        grid_spec=pltpu.PrefetchScalarGridSpec(
            num_scalar_prefetch=0,
            grid=(num_blocks,),
            in_specs=in_specs,
            out_specs=pl.BlockSpec((block_rows, lanes), lambda i: (i, 0)),
        ),
        compiler_params=pltpu.CompilerParams(
            dimension_semantics=("parallel",),
            vmem_limit_bytes=_VMEM_LIMIT_BYTES,
        ),
    )(*operands)

    return out.reshape(orig_shape)                 # contiguous reshape -> bitcast


if __name__ == "__main__":
    key = jax.random.PRNGKey(0)

    def ref_ln(x, w):
        xf = x.astype(jnp.float32)
        m = jnp.mean(xf, axis=-1, keepdims=True)
        v = jnp.mean((xf - m) ** 2, axis=-1, keepdims=True)
        return (xf - m) * jax.lax.rsqrt(v + _EPS) * w.astype(jnp.float32)

    ok = True

    # 1) 3-D bf16 input, small hidden dim (lane-packed path); weight = ones (init)
    B, S, D = 2, 8, 32
    w = jnp.ones((D,), dtype=jnp.float32)
    x3 = jax.random.normal(key, (B, S, D), dtype=jnp.float32).astype(jnp.bfloat16)
    y3 = layer_norm(x3, w)
    jax.block_until_ready(y3)
    ok &= bool(jnp.allclose(y3, ref_ln(x3, w), atol=1e-4, rtol=1e-4))
    ok &= (y3.dtype == jnp.float32) and (y3.shape == (B, S, D))

    # 2) 2-D fp32 input (the module's other forward branch)
    x2 = jax.random.normal(jax.random.fold_in(key, 1), (B, D), dtype=jnp.float32)
    y2 = layer_norm(x2, w)
    jax.block_until_ready(y2)
    ok &= bool(jnp.allclose(y2, ref_ln(x2, w), atol=1e-4, rtol=1e-4))
    ok &= (y2.dtype == jnp.float32) and (y2.shape == (B, D))

    # 3) 3-D bf16, 128-multiple hidden dim (row-wise path), non-trivial weight,
    #    multi-block grid
    D2 = 256
    w2 = 0.5 + jax.random.uniform(jax.random.fold_in(key, 2), (D2,), dtype=jnp.float32)
    xb = jax.random.normal(
        jax.random.fold_in(key, 3), (2, 8, D2), dtype=jnp.float32
    ).astype(jnp.bfloat16)
    yb = layer_norm(xb, w2)
    jax.block_until_ready(yb)
    ok &= bool(jnp.allclose(yb, ref_ln(xb, w2), atol=1e-4, rtol=1e-4))

    # 4) Ragged final block on the row-wise path (no wrapper-side pad / slice)
    xr = jax.random.normal(
        jax.random.fold_in(key, 4), (3, 7, D2), dtype=jnp.float32
    ).astype(jnp.bfloat16)
    yr = layer_norm(xr, w2)
    jax.block_until_ready(yr)
    ok &= bool(jnp.allclose(yr, ref_ln(xr, w2), atol=1e-4, rtol=1e-4))

    # 5) Ragged final block on the lane-packed path (multi-step resident avg matrix)
    xp = jax.random.normal(
        jax.random.fold_in(key, 5), (2, 50, D), dtype=jnp.float32
    ).astype(jnp.bfloat16)
    yp = layer_norm(xp, w)
    jax.block_until_ready(yp)
    ok &= bool(jnp.allclose(yp, ref_ln(xp, w), atol=1e-4, rtol=1e-4))

    if not ok:
        raise SystemExit("mismatch vs reference")
    print("KERNEL_OK")
</pallas_src>

<mosaic_0001>
module attributes {stable_mosaic.version = 11 : i64} {
  func.func @_ln_packed_kernel(%arg0: i32, %arg1: memref<4x128xbf16, #tpu.memory_space<vmem>>, %arg2: memref<1x128xf32, #tpu.memory_space<vmem>>, %arg3: memref<128x128xf32, #tpu.memory_space<vmem>>, %arg4: memref<4x128xf32, #tpu.memory_space<vmem>>) attributes {dimension_semantics = [#tpu.dimension_semantics<parallel>], iteration_bounds = array<i64: 1>, scalar_prefetch = 0 : i64, scratch_operands = 0 : i64, tpu.core_type = #tpu.core_type<tc>, window_params = [{transform_indices = @transform_0, window_bounds = array<i64: 4, 128>}, {pipeline_mode = #tpu.pipeline_mode<synchronous>, transform_indices = @transform_1, window_bounds = array<i64: 1, 128>}, {pipeline_mode = #tpu.pipeline_mode<synchronous>, transform_indices = @transform_2, window_bounds = array<i64: 128, 128>}, {transform_indices = @transform_3, window_bounds = array<i64: 4, 128>}]} {
    %c0 = arith.constant 0 : index
    %c0_0 = arith.constant 0 : index
    %0 = vector.load %arg1[%c0, %c0_0] : memref<4x128xbf16, #tpu.memory_space<vmem>>, vector<4x128xbf16>
    %1 = arith.extf %0 : vector<4x128xbf16> to vector<4x128xf32>
    %c0_1 = arith.constant 0 : index
    %c0_2 = arith.constant 0 : index
    %2 = vector.load %arg3[%c0_1, %c0_2] : memref<128x128xf32, #tpu.memory_space<vmem>>, vector<128x128xf32>
    %cst = arith.constant dense<0.000000e+00> : vector<4x128xf32>
    %3 = tpu.matmul %1, %2, %cst {dimension_numbers = #tpu.dot_dimension_numbers<[1], [0], [0], [1], [0, 0, 1, 1], [], []>, precision = #tpu.contract_precision<fp32>} : vector<4x128xf32>, vector<128x128xf32>, vector<4x128xf32> -> vector<4x128xf32>
    %4 = arith.subf %1, %3 : vector<4x128xf32>
    %5 = arith.mulf %4, %4 : vector<4x128xf32>
    %cst_3 = arith.constant dense<0.000000e+00> : vector<4x128xf32>
    %6 = tpu.matmul %5, %2, %cst_3 {dimension_numbers = #tpu.dot_dimension_numbers<[1], [0], [0], [1], [0, 0, 1, 1], [], []>, precision = #tpu.contract_precision<fp32>} : vector<4x128xf32>, vector<128x128xf32>, vector<4x128xf32> -> vector<4x128xf32>
    %cst_4 = arith.constant 9.99999974E-6 : f32
    %7 = vector.broadcast %cst_4 : f32 to vector<4x128xf32>
    %8 = arith.addf %6, %7 : vector<4x128xf32>
    %9 = math.rsqrt %8 : vector<4x128xf32>
    %10 = arith.mulf %4, %9 : vector<4x128xf32>
    %c0_5 = arith.constant 0 : index
    %c0_6 = arith.constant 0 : index
    %11 = vector.load %arg2[%c0_5, %c0_6] : memref<1x128xf32, #tpu.memory_space<vmem>>, vector<1x128xf32>
    %12 = vector.broadcast %11 : vector<1x128xf32> to vector<4x128xf32>
    %13 = arith.mulf %10, %12 : vector<4x128xf32>
    %c0_7 = arith.constant 0 : index
    %c0_8 = arith.constant 0 : index
    %14 = vector.load %arg4[%c0_7, %c0_8] : memref<4x128xf32, #tpu.memory_space<vmem>>, vector<4x128xf32>
    tpu.vector_store %arg4[%c0_7, %c0_8], %13 {strides = array<i32>} : memref<4x128xf32, #tpu.memory_space<vmem>>, vector<4x128xf32>,
    return
  }
  func.func @transform_0(%arg0: i32) -> (i32, i32) {
    %c0_i32 = arith.constant 0 : i32
    %c0_i32_0 = arith.constant 0 : i32
    return %arg0, %c0_i32 : i32, i32
  }
  func.func @transform_1(%arg0: i32) -> (i32, i32) {
    %c0_i32 = arith.constant 0 : i32
    %c0_i32_0 = arith.constant 0 : i32
    %c0_i32_1 = arith.constant 0 : i32
    return %c0_i32, %c0_i32_0 : i32, i32
  }
  func.func @transform_2(%arg0: i32) -> (i32, i32) {
    %c0_i32 = arith.constant 0 : i32
    %c0_i32_0 = arith.constant 0 : i32
    %c0_i32_1 = arith.constant 0 : i32
    return %c0_i32, %c0_i32_0 : i32, i32
  }
  func.func @transform_3(%arg0: i32) -> (i32, i32) {
    %c0_i32 = arith.constant 0 : i32
    %c0_i32_0 = arith.constant 0 : i32
    return %arg0, %c0_i32 : i32, i32
  }
}

</mosaic_0001>

<bundles_post_ra>
// kernel: tpu_custom_call.1
= control target key start
LH: loop header
LB: loop body
LE: loop exit
PB: predicated region body
PF: predicated region fallthrough
CT: control target
= control target key end

     0   :  { %8 = vsyncpa [#allocation3], 0  ;;  %s1330_s0 = inlined_call_operand.hbm [shape: bf16[4,128], index: 0, kind: input, shape index: {}]   ;;  %s1331_s1 = inlined_call_operand.hbm [shape: f32[1,128], index: 1, kind: input, shape index: {}]   ;;  %s1332_s2 = inlined_call_operand.hbm [shape: f32[128,128], index: 2, kind: input, shape index: {}]   ;;  %s1333_s3 = inlined_call_operand.hbm [shape: f32[4,128], index: 3, kind: output, shape index: {}]  }
   0x1   :  { %9 = vsyncpa [#allocation6], 0  ;;  %s27_s14 = sshll.u32 %s1331_s1, 4  ;;  %s28_s14 = int_to_ptr.hbm [resolvable:$true] %s27_s14 }
   0x2   :  { %10 = vsyncpa [#allocation4], 0  ;;  %s900_s15 = smov [#allocation5]   ;;  %s16_s19 = sshll.u32 %s1330_s0, 4  ;;  %s17_s19 = int_to_ptr.hbm [resolvable:$true] %s16_s19 }
   0x3   :  { %s29_s16 = sshll.u32 %s900_s15, 4  ;;  %s901_s20 = smov [#allocation2]   ;;  %s30_s16 = int_to_ptr.vmem [resolvable:$true] %s29_s16 }
   0x4   :  { %32 = dma.hbm_to_vmem [thread:$0]  %s28_s14, 16, %s30_s16, [#allocation6]  }
   0x5   :  { %s18_s21 = sshll.u32 %s901_s20, 4  ;;  %s37_s24 = sshll.u32 %s1332_s2, 4  ;;  %s19_s21 = int_to_ptr.vmem [resolvable:$true] %s18_s21  ;;  %s38_s24 = int_to_ptr.hbm [resolvable:$true] %s37_s24 }
   0x6   :  { %21 = dma.hbm_to_vmem [thread:$0]  %s17_s19, 32, %s19_s21, [#allocation3]  }
   0x7   :  { %s902_s1 = smov [#allocation7]   ;;  %s903_s26 = smov 128  }
   0x8   :  { %s39_s25 = sshll.u32 %s902_s1, 4  ;;  %s904_s27 = smov 8   ;;  %s40_s25 = int_to_ptr.vmem [resolvable:$true] %s39_s25 }
   0x9   :  { %45 = dma.hbm_to_vmem [thread:$0]  %s38_s24, 2048, %s40_s25, [#allocation6], %s903_s26, %s903_s26, %s904_s27  }
   0xa   :  { %894 = dma.done.wait [#allocation3], 32  }
   0xb   :  { %895 = vsyncadd [#allocation3], 4294967264 }
   0xc   :  { %896 = dma.done.wait [#allocation6], 2064  }
   0xd   :  { %897 = vsyncadd [#allocation6], 4294965232  ;;  %v75_v0 = vld [vmem:[#allocation7 + $0x78] sm:$0xff]  ;;  %v74_v1 = vld [vmem:[#allocation7 + $0x70] sm:$0xff]  ;;  %s905_s0 = smov [#allocation8]   ;;  %s778_s30 = sshll.u32 %s1333_s3, 4  ;;  %s779_s30 = int_to_ptr.hbm [resolvable:$true] %s778_s30 }
   0xe   :  { %v73_v2 = vld [vmem:[#allocation7 + $0x68] sm:$0xff]  ;;  %v935_v3 = vand.u32 4294901760, %v75_v0  ;;  %v937_v4 = vand.u32 4294901760, %v74_v1  ;;  %v72_v6 = vld [vmem:[#allocation7 + $0x60] sm:$0xff]  ;;  %v71_v7 = vld [vmem:[#allocation7 + $0x58] sm:$0xff]  ;;  %s776_s2 = sshll.u32 %s905_s0, 4  ;;  %s777_s2 = int_to_ptr.vmem [resolvable:$true] %s776_s2 }
   0xf   :  { %v939_v5 = vand.u32 4294901760, %v73_v2  ;;  %v70_v8 = vld [vmem:[#allocation7 + $0x50] sm:$0xff]  ;;  %v941_v9 = vand.u32 4294901760, %v72_v6  ;;  %v943_v10 = vand.u32 4294901760, %v71_v7  ;;  %v69_v12 = vld [vmem:[#allocation7 + $0x48] sm:$0xff]  ;;  %v68_v13 = vld [vmem:[#allocation7 + $0x40] sm:$0xff] }
  0x10   :  { %v945_v11 = vand.u32 4294901760, %v70_v8  ;;  %77 = vmatpush.msra.mxu0 %v935_v3  ;;  %v949_v14 = vsub.f32 %v75_v0, %v935_v3  ;;  %v952_v15 = vsub.f32 %v74_v1, %v937_v4  ;;  %v957_v17 = vand.u32 4294901760, %v69_v12  ;;  %v67_v18 = vld [vmem:[#allocation7 + $0x38] sm:$0xff]  ;;  %270 = vmatpush.msra.mxu3 %v935_v3  ;;  %v66_v26 = vld [vmem:[#allocation7 + $0x30] sm:$0xff]  ;;  %v65_v36 = vld [vmem:[#allocation7 + $0x28] sm:$0xff] }
  0x11   :  { %v955_v16 = vsub.f32 %v73_v2, %v939_v5  ;;  %v961_v19 = vsub.f32 %v72_v6, %v941_v9  ;;  %v964_v20 = vsub.f32 %v71_v7, %v943_v10  ;;  %v979_v25 = vand.u32 4294901760, %v68_v13  ;;  %v64_v42 = vld [vmem:[#allocation7 + $0x20] sm:$0xff]  ;;  %v63_v47 = vld [vmem:[#allocation7 + $0x18] sm:$0xff]  ;;  %v62_v55 = vld [vmem:[#allocation7 + $0x10] sm:$0xff] }
  0x12   :  { %v967_v21 = vsub.f32 %v70_v8, %v945_v11  ;;  %79 = vmatpush.msra.mxu0 %v937_v4  ;;  %v971_v22 = vand.u32 4294901760, %v949_v14  ;;  %v974_v23 = vand.u32 4294901760, %v952_v15  ;;  %218 = vmatpush.msra.mxu2 %v949_v14  ;;  %v985_v28 = vand.u32 4294901760, %v67_v18  ;;  %v61_v60 = vld [vmem:[#allocation7 + $0x8] sm:$0xff]  ;;  %v60_v1 = vld [vmem:[#allocation7] sm:$0xff] }
  0x13   :  { %v977_v24 = vand.u32 4294901760, %v955_v16  ;;  %v983_v27 = vand.u32 4294901760, %v961_v19  ;;  %v988_v29 = vsub.f32 %v69_v12, %v957_v17  ;;  %272 = vmatpush.msra.mxu3 %v937_v4  ;;  %v999_v33 = vand.u32 4294901760, %v964_v20  ;;  %v58_v7 = vld [vmem:[#allocation2] sm:$0x3] }
  0x14   :  { %81 = vmatpush.msra.mxu0 %v939_v5  ;;  %v119_v30 = vsub.f32 %v949_v14, %v971_v22  ;;  %v125_v31 = vsub.f32 %v952_v15, %v974_v23  ;;  %221 = vmatpush.msra.mxu2 %v952_v15  ;;  %v1003_v34 = vand.u32 4294901760, %v967_v21  ;;  %v1005_v35 = vand.u32 4294901760, %v66_v26 }
  0x15   :  { %v131_v32 = vsub.f32 %v955_v16, %v977_v24  ;;  %274 = vmatpush.msra.mxu3 %v939_v5  ;;  %v137_v39 = vsub.f32 %v961_v19, %v983_v27  ;;  %v1016_v40 = vsub.f32 %v68_v13, %v979_v25  ;;  %v1020_v41 = vand.u32 4294901760, %v988_v29 }
  0x16   :  { %v1008_v37 = vand.u32 4294901760, %v119_v30  ;;  %83 = vmatpush.msra.mxu0 %v941_v9  ;;  %v1011_v38 = vand.u32 4294901760, %v125_v31  ;;  %224 = vmatpush.msra.mxu2 %v955_v16  ;;  %v143_v44 = vsub.f32 %v964_v20, %v999_v33  ;;  %v1029_v45 = vand.u32 4294901760, %v65_v36 }
  0x17   :  { %1341 = vst [vmem:[#allocation12_spill] sm:$0xff] %v1016_v40  ;;  %276 = vmatpush.msra.mxu3 %v941_v9  ;;  %v1025_v43 = vand.u32 4294901760, %v131_v32  ;;  %v1032_v46 = vsub.f32 %v67_v18, %v985_v28  ;;  %v149_v48 = vsub.f32 %v967_v21, %v1003_v34  ;;  %v1040_v49 = vand.u32 4294901760, %v137_v39 }
  0x18   :  { %121 = vmatpush.msra.mxu1 %v1008_v37  ;;  %85 = vmatpush.msra.mxu0 %v943_v10  ;;  %v1043_v50 = vand.u32 4294901760, %v1016_v40  ;;  %v1045_v51 = vand.u32 4294901760, %v64_v42  ;;  %v1048_v52 = vsub.f32 %v66_v26, %v1005_v35  ;;  %v155_v53 = vsub.f32 %v988_v29, %v1020_v41 }
  0x19   :  { %1342 = vst [vmem:[#allocation13_spill] sm:$0xff] %v1032_v46  ;;  %227 = vmatpush.msra.mxu2 %v961_v19  ;;  %278 = vmatpush.msra.mxu3 %v943_v10  ;;  %v1052_v54 = vand.u32 4294901760, %v63_v47  ;;  %v1058_v56 = vand.u32 4294901760, %v143_v44  ;;  %v1061_v57 = vand.u32 4294901760, %v1032_v46  ;;  %v1064_v58 = vsub.f32 %v65_v36, %v1029_v45 }
  0x1a   :  { %127 = vmatpush.msra.mxu1 %v1011_v38  ;;  %87 = vmatpush.msra.mxu0 %v945_v11  ;;  %1343 = vst [vmem:[#allocation14_spill] sm:$0xff] %v1048_v52  ;;  %v1066_v59 = vand.u32 4294901760, %v149_v48  ;;  %v161_v61 = vsub.f32 %v1016_v40, %v1043_v50  ;;  %v1075_v62 = vand.u32 4294901760, %v1048_v52  ;;  %v1077_v63 = vand.u32 4294901760, %v62_v55 }
  0x1b   :  { %230 = vmatpush.msra.mxu2 %v964_v20  ;;  %280 = vmatpush.msra.mxu3 %v945_v11  ;;  %1344 = vst [vmem:[#allocation15_spill] sm:$0xff] %v1064_v58  ;;  %v1080_v0 = vsub.f32 %v64_v42, %v1045_v51  ;;  %v1082_v2 = vand.u32 4294901760, %v155_v53  ;;  %v1085_v6 = vsub.f32 %v63_v47, %v1052_v54  ;;  %v1094_v12 = vand.u32 4294901760, %v1064_v58 }
  0x1c   :  { %133 = vmatpush.msra.mxu1 %v1025_v43  ;;  %89 = vmatpush.msra.mxu0 %v957_v17  ;;  %v167_v8 = vsub.f32 %v1032_v46, %v1061_v57  ;;  %v1096_v13 = vand.u32 4294901760, %v61_v60  ;;  %v1098_v18 = vunpack.c.l.bf16 %v58_v7  ;;  %v1100_v26 = vand.u32 4294901760, %v60_v1 }
  0x1d   :  { %233 = vmatpush.msra.mxu2 %v967_v21  ;;  %282 = vmatpush.msra.mxu3 %v957_v17  ;;  %1345 = vst [vmem:[#allocation16_spill] sm:$0xff] %v1080_v0  ;;  %v1106_v30 = vand.u32 4294901760, %v161_v61  ;;  %v173_v31 = vsub.f32 %v1048_v52, %v1075_v62  ;;  %v1111_v32 = vand.u32 4294901760, %v1080_v0  ;;  %v1114_v36 = vsub.f32 %v62_v55, %v1077_v63 }
  0x1e   :  { %139 = vmatpush.msra.mxu1 %v1040_v49  ;;  %91 = vmatpush.msra.mxu0 %v979_v25  ;;  %1346 = vst [vmem:[#allocation17_spill] sm:$0xff] %v1085_v6  ;;  %v1117_v39 = vand.u32 4294901760, %v1085_v6  ;;  %v1123_v42 = vand.u32 4294901760, %v167_v8  ;;  %v179_v44 = vsub.f32 %v1064_v58, %v1094_v12  ;;  %v1128_v47 = vsub.f32 %v61_v60, %v1096_v13 }
  0x1f   :  { %236 = vmatpush.msra.mxu2 %v988_v29  ;;  %284 = vmatpush.msra.mxu3 %v979_v25  ;;  %1347 = vst [vmem:[#allocation18_spill] sm:$0xff] %v1114_v36  ;;  %v108_v48 = vsub.f32 %v1098_v18, %v1098_v18  ;;  %v1136_v53 = vand.u32 4294901760, %v173_v31  ;;  %v185_v55 = vsub.f32 %v1080_v0, %v1111_v32  ;;  %v1141_v61 = vand.u32 4294901760, %v1114_v36 }
  0x20   :  { %145 = vmatpush.msra.mxu1 %v1058_v56  ;;  %93 = vmatpush.msra.mxu0 %v985_v28  ;;  %v1144_v60 = vsub.f32 %v60_v1, %v1100_v26  ;;  %v1150_v7 = vand.u32 4294901760, %v179_v44  ;;  %v191_v8 = vsub.f32 %v1085_v6, %v1117_v39  ;;  %v1155_v31 = vand.u32 4294901760, %v1128_v47 }
  0x21   :  { %239 = vmatpush.msra.mxu2 %v1016_v40  ;;  %286 = vmatpush.msra.mxu3 %v985_v28  ;;  %v1161_v1 = vand.u32 4294901760, %v185_v55  ;;  %v197_v44 = vsub.f32 %v1114_v36, %v1141_v61 }
  0x22   :  { %151 = vmatpush.msra.mxu1 %v1066_v59  ;;  %95 = vmatpush.msra.mxu0 %v1005_v35  ;;  %v203_v55 = vsub.f32 %v1128_v47, %v1155_v31 }
  0x23   :  { %242 = vmatpush.msra.mxu2 %v1032_v46  ;;  %288 = vmatpush.msra.mxu3 %v1005_v35 }
  0x24   :  { %157 = vmatpush.msra.mxu1 %v1082_v2  ;;  %97 = vmatpush.msra.mxu0 %v1029_v45 }
  0x25   :  { %245 = vmatpush.msra.mxu2 %v1048_v52  ;;  %290 = vmatpush.msra.mxu3 %v1029_v45  ;;  %v109_v52 = vand.u32 4294901760, %v108_v48 }
  0x26   :  { %163 = vmatpush.msra.mxu1 %v1106_v30  ;;  %99 = vmatpush.msra.mxu0 %v1045_v51 }
  0x27   :  { %248 = vmatpush.msra.mxu2 %v1064_v58  ;;  %292 = vmatpush.msra.mxu3 %v1045_v51  ;;  %v1166_v58 = vand.u32 4294901760, %v1144_v60  ;;  %v110_v46 = vsub.f32 %v108_v48, %v109_v52 }
  0x28   :  { %169 = vmatpush.msra.mxu1 %v1123_v42  ;;  %101 = vmatpush.msra.mxu0 %v1052_v54 }
  0x29   :  { %251 = vmatpush.msra.mxu2 %v1080_v0  ;;  %294 = vmatpush.msra.mxu3 %v1052_v54  ;;  %v1172_v0 = vand.u32 4294901760, %v191_v8  ;;  %v209_v40 = vsub.f32 %v1144_v60, %v1166_v58  ;;  %v1187_v8 = vand.u32 4294901760, %v203_v55 }
  0x2a   :  { %175 = vmatpush.msra.mxu1 %v1136_v53  ;;  %103 = vmatpush.msra.mxu0 %v1077_v63 }
  0x2b   :  { %254 = vmatpush.msra.mxu2 %v1085_v6  ;;  %296 = vmatpush.msra.mxu3 %v1077_v63  ;;  %v1180_v6 = vand.u32 4294901760, %v197_v44  ;;  %v1193_v44 = vand.u32 4294901760, %v209_v40 }
  0x2c   :  { %181 = vmatpush.msra.mxu1 %v1150_v7  ;;  %105 = vmatpush.msra.mxu0 %v1096_v13 }
  0x2d   :  { %257 = vmatpush.msra.mxu2 %v1114_v36  ;;  %298 = vmatpush.msra.mxu3 %v1096_v13  ;;  %v111_v36 = vand.u32 4294901760, %v110_v46 }
  0x2e   :  { %187 = vmatpush.msra.mxu1 %v1161_v1  ;;  %107 = vmatpush.msra.mxu0 %v1100_v26 }
  0x2f   :  { %260 = vmatpush.msra.mxu2 %v1128_v47  ;;  %300 = vmatpush.msra.mxu3 %v1100_v26 }
  0x30   :  { %310 = vmatpush.msrb.mxu0 %v971_v22  ;;  %193 = vmatpush.msra.mxu1 %v1172_v0 }
  0x31   :  { %263 = vmatpush.msra.mxu2 %v1144_v60  ;;  %303 = vmatmul.f32.vlgmr.msra.gmra.mxu3 %v109_v52 }
  0x32   :  { %314 = vmatpush.msrb.mxu0 %v974_v23  ;;  %199 = vmatpush.msra.mxu1 %v1180_v6 }
  0x33   :  { %265 = vmatmul.f32.vlgmr.msra.gmra.mxu2 %v108_v48  ;;  %112 = vmatmul.f32.vlgmr.msra.gmra.mxu0 %v111_v36 }
  0x34   :  { %318 = vmatpush.msrb.mxu0 %v977_v24  ;;  %205 = vmatpush.msra.mxu1 %v1187_v8 }
  0x35   :  { %459 = vmatpush.msrb.mxu3 %v1008_v37  ;;  %414 = vmatpush.msrb.mxu2 %v935_v3 }
  0x36   :  { %322 = vmatpush.msrb.mxu0 %v983_v27  ;;  %211 = vmatpush.msra.mxu1 %v1193_v44 }
  0x37   :  { %212 = vmatmul.f32.vlgmr.msra.gmra.mxu1 %v1098_v18  ;;  %465 = vmatpush.msrb.mxu3 %v1011_v38 }
  0x38   :  { %376 = vmatpush.msrb.mxu1 %v935_v3  ;;  %326 = vmatpush.msrb.mxu0 %v999_v33 }
  0x39   :  { %471 = vmatpush.msrb.mxu3 %v1025_v43  ;;  %416 = vmatpush.msrb.mxu2 %v937_v4 }
  0x3a   :  { %378 = vmatpush.msrb.mxu1 %v937_v4  ;;  %330 = vmatpush.msrb.mxu0 %v1003_v34 }
  0x3b   :  { %477 = vmatpush.msrb.mxu3 %v1040_v49  ;;  %418 = vmatpush.msrb.mxu2 %v939_v5 }
  0x3c   :  { %380 = vmatpush.msrb.mxu1 %v939_v5  ;;  %334 = vmatpush.msrb.mxu0 %v1020_v41 }
  0x3d   :  { %483 = vmatpush.msrb.mxu3 %v1058_v56  ;;  %420 = vmatpush.msrb.mxu2 %v941_v9 }
  0x3e   :  { %382 = vmatpush.msrb.mxu1 %v941_v9  ;;  %338 = vmatpush.msrb.mxu0 %v1043_v50 }
  0x3f   :  { %489 = vmatpush.msrb.mxu3 %v1066_v59  ;;  %422 = vmatpush.msrb.mxu2 %v943_v10 }
  0x40   :  { %384 = vmatpush.msrb.mxu1 %v943_v10  ;;  %342 = vmatpush.msrb.mxu0 %v1061_v57 }
  0x41   :  { %495 = vmatpush.msrb.mxu3 %v1082_v2  ;;  %424 = vmatpush.msrb.mxu2 %v945_v11 }
  0x42   :  { %386 = vmatpush.msrb.mxu1 %v945_v11  ;;  %346 = vmatpush.msrb.mxu0 %v1075_v62 }
  0x43   :  { %501 = vmatpush.msrb.mxu3 %v1106_v30  ;;  %426 = vmatpush.msrb.mxu2 %v957_v17 }
  0x44   :  { %388 = vmatpush.msrb.mxu1 %v957_v17  ;;  %350 = vmatpush.msrb.mxu0 %v1094_v12 }
  0x45   :  { %507 = vmatpush.msrb.mxu3 %v1123_v42  ;;  %428 = vmatpush.msrb.mxu2 %v979_v25 }
  0x46   :  { %390 = vmatpush.msrb.mxu1 %v979_v25  ;;  %354 = vmatpush.msrb.mxu0 %v1111_v32 }
  0x47   :  { %513 = vmatpush.msrb.mxu3 %v1136_v53  ;;  %430 = vmatpush.msrb.mxu2 %v985_v28 }
  0x48   :  { %392 = vmatpush.msrb.mxu1 %v985_v28  ;;  %358 = vmatpush.msrb.mxu0 %v1117_v39 }
  0x49   :  { %519 = vmatpush.msrb.mxu3 %v1150_v7  ;;  %432 = vmatpush.msrb.mxu2 %v1005_v35 }
  0x4a   :  { %394 = vmatpush.msrb.mxu1 %v1005_v35  ;;  %362 = vmatpush.msrb.mxu0 %v1141_v61 }
  0x4b   :  { %525 = vmatpush.msrb.mxu3 %v1161_v1  ;;  %434 = vmatpush.msrb.mxu2 %v1029_v45 }
  0x4c   :  { %396 = vmatpush.msrb.mxu1 %v1029_v45  ;;  %366 = vmatpush.msrb.mxu0 %v1155_v31 }
  0x4d   :  { %531 = vmatpush.msrb.mxu3 %v1172_v0  ;;  %436 = vmatpush.msrb.mxu2 %v1045_v51 }
  0x4e   :  { %398 = vmatpush.msrb.mxu1 %v1045_v51  ;;  %370 = vmatpush.msrb.mxu0 %v1166_v58 }
  0x4f   :  { %371 = vmatmul.f32.vlgmr.msrb.gmra.mxu0 %v1098_v18  ;;  %537 = vmatpush.msrb.mxu3 %v1180_v6  ;;  %v795_v6 = vld [vmem:[#allocation5] ss:$0 sm:$0xff] }
  0x50   :  { %400 = vmatpush.msrb.mxu1 %v1052_v54  ;;  %557 = vmatpush.msra.mxu0 %v949_v14  ;;  %v1354_v14 = vld [vmem:[#allocation18_spill] sm:$0xff] }
  0x51   :  { %543 = vmatpush.msrb.mxu3 %v1187_v8  ;;  %438 = vmatpush.msrb.mxu2 %v1052_v54 }
  0x52   :  { %402 = vmatpush.msrb.mxu1 %v1077_v63  ;;  %560 = vmatpush.msra.mxu0 %v952_v15 }
  0x53   :  { %549 = vmatpush.msrb.mxu3 %v1193_v44  ;;  %440 = vmatpush.msrb.mxu2 %v1077_v63 }
  0x54   :  { %404 = vmatpush.msrb.mxu1 %v1096_v13  ;;  %563 = vmatpush.msra.mxu0 %v955_v16 }
  0x55   :  { %718 = vmatpush.msra.mxu3 %v935_v3  ;;  %442 = vmatpush.msrb.mxu2 %v1096_v13 }
  0x56   :  { %406 = vmatpush.msrb.mxu1 %v1100_v26  ;;  %566 = vmatpush.msra.mxu0 %v961_v19 }
  0x57   :  { %407 = vmatmul.f32.vlgmr.msrb.gmra.mxu1 %v1098_v18  ;;  %720 = vmatpush.msra.mxu3 %v937_v4 }
  0x58   :  { %610 = vmatpush.msra.mxu1 %v935_v3  ;;  %569 = vmatpush.msra.mxu0 %v964_v20  ;;  %v1348_v3 = vld [vmem:[#allocation12_spill] sm:$0xff] }
  0x59   :  { %722 = vmatpush.msra.mxu3 %v939_v5  ;;  %444 = vmatpush.msrb.mxu2 %v1100_v26 }
  0x5a   :  { %612 = vmatpush.msra.mxu1 %v937_v4  ;;  %572 = vmatpush.msra.mxu0 %v967_v21  ;;  %v1349_v4 = vld [vmem:[#allocation13_spill] sm:$0xff] }
  0x5b   :  { %724 = vmatpush.msra.mxu3 %v941_v9  ;;  %651 = vmatpush.msra.mxu2 %v971_v22 }
  0x5c   :  { %614 = vmatpush.msra.mxu1 %v939_v5  ;;  %575 = vmatpush.msra.mxu0 %v988_v29  ;;  %v1350_v5 = vld [vmem:[#allocation14_spill] sm:$0xff] }
  0x5d   :  { %726 = vmatpush.msra.mxu3 %v943_v10  ;;  %655 = vmatpush.msra.mxu2 %v974_v23 }
  0x5e   :  { %616 = vmatpush.msra.mxu1 %v941_v9  ;;  %578 = vmatpush.msra.mxu0 %v1348_v3  ;;  %v1351_v9 = vld [vmem:[#allocation15_spill] sm:$0xff] }
  0x5f   :  { %728 = vmatpush.msra.mxu3 %v945_v11  ;;  %659 = vmatpush.msra.mxu2 %v977_v24 }
  0x60   :  { %618 = vmatpush.msra.mxu1 %v943_v10  ;;  %581 = vmatpush.msra.mxu0 %v1349_v4  ;;  %v1352_v10 = vld [vmem:[#allocation16_spill] sm:$0xff] }
  0x61   :  { %730 = vmatpush.msra.mxu3 %v957_v17  ;;  %663 = vmatpush.msra.mxu2 %v983_v27 }
  0x62   :  { %620 = vmatpush.msra.mxu1 %v945_v11  ;;  %584 = vmatpush.msra.mxu0 %v1350_v5  ;;  %v1353_v11 = vld [vmem:[#allocation17_spill] sm:$0xff] }
  0x63   :  { %732 = vmatpush.msra.mxu3 %v979_v25  ;;  %667 = vmatpush.msra.mxu2 %v999_v33 }
  0x64   :  { %622 = vmatpush.msra.mxu1 %v957_v17  ;;  %587 = vmatpush.msra.mxu0 %v1351_v9 }
  0x65   :  { %734 = vmatpush.msra.mxu3 %v985_v28  ;;  %671 = vmatpush.msra.mxu2 %v1003_v34 }
  0x66   :  { %624 = vmatpush.msra.mxu1 %v979_v25  ;;  %590 = vmatpush.msra.mxu0 %v1352_v10 }
  0x67   :  { %736 = vmatpush.msra.mxu3 %v1005_v35  ;;  %675 = vmatpush.msra.mxu2 %v1020_v41 }
  0x68   :  { %626 = vmatpush.msra.mxu1 %v985_v28  ;;  %593 = vmatpush.msra.mxu0 %v1353_v11 }
  0x69   :  { %738 = vmatpush.msra.mxu3 %v1029_v45  ;;  %679 = vmatpush.msra.mxu2 %v1043_v50 }
  0x6a   :  { %628 = vmatpush.msra.mxu1 %v1005_v35  ;;  %596 = vmatpush.msra.mxu0 %v1354_v14 }
  0x6b   :  { %740 = vmatpush.msra.mxu3 %v1045_v51  ;;  %683 = vmatpush.msra.mxu2 %v1061_v57 }
  0x6c   :  { %630 = vmatpush.msra.mxu1 %v1029_v45  ;;  %599 = vmatpush.msra.mxu0 %v1128_v47 }
  0x6d   :  { %742 = vmatpush.msra.mxu3 %v1052_v54  ;;  %687 = vmatpush.msra.mxu2 %v1075_v62 }
  0x6e   :  { %632 = vmatpush.msra.mxu1 %v1045_v51  ;;  %602 = vmatpush.msra.mxu0 %v1144_v60 }
  0x6f   :  { %744 = vmatpush.msra.mxu3 %v1077_v63  ;;  %691 = vmatpush.msra.mxu2 %v1094_v12 }
  0x70   :  { %634 = vmatpush.msra.mxu1 %v1052_v54 }
  0x71   :  { %746 = vmatpush.msra.mxu3 %v1096_v13  ;;  %695 = vmatpush.msra.mxu2 %v1111_v32 }
  0x72   :  { %636 = vmatpush.msra.mxu1 %v1077_v63 }
  0x73   :  { %748 = vmatpush.msra.mxu3 %v1100_v26  ;;  %699 = vmatpush.msra.mxu2 %v1117_v39 }
  0x74   :  { %638 = vmatpush.msra.mxu1 %v1096_v13 }
  0x75   :  { %703 = vmatpush.msra.mxu2 %v1141_v61 }
  0x76   :  { %640 = vmatpush.msra.mxu1 %v1100_v26 }
  0x77   :  { %707 = vmatpush.msra.mxu2 %v1155_v31 }
  0x79   :  { %711 = vmatpush.msra.mxu2 %v1166_v58 }
  0xb0   :  { %v113_v16 = vpop.f32.mrf.mxu0 }
  0xb4   :  { %v213_v15 = vpop.f32.mrf.mxu1  ;;  %v304_v21 = vpop.f32.mrf.mxu3 }
  0xb5   :  { %v214_v17 = vadd.f32 %v213_v15, %v113_v16 }
  0xb6   :  { %v266_v19 = vpop.f32.mrf.mxu2 }
  0xb7   :  { %v267_v20 = vadd.f32 %v266_v19, %v214_v17 }
  0xb9   :  { %v305_v22 = vadd.f32 %v304_v21, %v267_v20 }
  0xcc   :  { %v372_v23 = vpop.f32.mrf.mxu0 }
  0xcd   :  { %v373_v24 = vadd.f32 %v372_v23, %v305_v22 }
  0xd4   :  { %v408_v25 = vpop.f32.mrf.mxu1 }
  0xd5   :  { %v409_v27 = vadd.f32 %v408_v25, %v373_v24 }
  0xd7   :  { %v411_v28 = vsub.f32 %v1098_v18, %v409_v27 }
  0xd9   :  { %v412_v29 = vmul.f32 %v411_v28, %v411_v28 }
  0xdb   :  { %v445_v33 = vand.u32 4294901760, %v412_v29 }
  0xdd   :  { %v446_v34 = vsub.f32 %v412_v29, %v445_v33  ;;  %551 = vmatmul.f32.vlgmr.msrb.gmra.mxu3 %v445_v33 }
  0xdf   :  { %605 = vmatmul.f32.vlgmr.msra.gmra.mxu0 %v446_v34  ;;  %v447_v35 = vand.u32 4294901760, %v446_v34 }
  0xe1   :  { %644 = vmatmul.f32.vlgmr.msra.gmra.mxu1 %v447_v35  ;;  %v448_v37 = vsub.f32 %v446_v34, %v447_v35 }
  0xe3   :  { %v449_v38 = vand.u32 4294901760, %v448_v37 }
  0xe5   :  { %450 = vmatmul.f32.vlgmr.msrb.gmra.mxu2 %v449_v38  ;;  %750 = vmatmul.f32.vlgmr.msra.gmra.mxu3 %v445_v33 }
  0xed   :  { %713 = vmatmul.f32.vlgmr.msra.gmra.mxu2 %v445_v33 }
 0x15c   :  { %v606_v46 = vpop.f32.mrf.mxu0 }
 0x15e   :  { %v645_v50 = vpop.f32.mrf.mxu1 }
 0x160   :  { %v552_v40 = vpop.f32.mrf.mxu3 }
 0x168   :  { %v451_v41 = vpop.f32.mrf.mxu2  ;;  %v751_v56 = vpop.f32.mrf.mxu3 }
 0x169   :  { %v452_v43 = vadd.f32 1e-05, %v451_v41 }
 0x16b   :  { %v553_v45 = vadd.f32 %v552_v40, %v452_v43 }
 0x16d   :  { %v607_v49 = vadd.f32 %v606_v46, %v553_v45 }
 0x16f   :  { %v646_v51 = vadd.f32 %v645_v50, %v607_v49 }
 0x170   :  { %v714_v52 = vpop.f32.mrf.mxu2 }
 0x171   :  { %v715_v54 = vadd.f32 %v714_v52, %v646_v51 }
 0x173   :  { %v752_v57 = vadd.f32 %v751_v56, %v715_v54 }
 0x175   :  { %796 = vrsqrt.f32 %v752_v57  ;;  %vm760_vm1 = vweird.f32 %v752_v57 }
 0x17b   :  { %v797_v58 = vpop.eup %796 }
 0x17c   :  { %v755_v59 = vmul.f32 %v797_v58, %v752_v57  ;;  %vm761_vm0 = vweird.f32 %v797_v58 }
 0x17d   :  { %vm762_vm2 = vmor %vm760_vm1, %vm761_vm0 }
 0x17e   :  { %v756_v62 = vmul.f32 %v797_v58, %v755_v59 }
 0x180   :  { %v757_v63 = vmul.f32 0.5, %v756_v62 }
 0x182   :  { %v758_v0 = vsub.f32 1.5, %v757_v63 }
 0x184   :  { %v759_v2 = vmul.f32 %v797_v58, %v758_v0 }
 0x186   :  { %v763_v12 = vsel %vm762_vm2, %v797_v58, %v759_v2 }
 0x187   :  { %v764_v13 = vmul.f32 %v763_v12, %v411_v28 }
 0x189   :  { %v769_v18 = vmul.f32 %v795_v6, %v764_v13 }
 0x18b   :  { %770 = vst [vmem:[#allocation8] sm:$0xf] %v769_v18 }
 0x18c   :  { %781 = dma.vmem_to_hbm [thread:$0]  %s777_s2, 64, %s779_s30, [#allocation4]  }
 0x18d   :  { %898 = dma.done.wait [#allocation4], 64  }
 0x18e   :  { %899 = vsyncadd [#allocation4], 4294967232 }
 0x18f   :  { %786 = vsyncpa [#allocation3], 1 }
 0x190   :  { %787 = vsyncpa [#allocation6], 1 }
 0x191   :  { %788 = vsyncpa [#allocation4], 1 }

</bundles_post_ra>
